<compile_context>
chip_gen: v5e
topology: v5e:2x2
jax: 0.10.0
libtpu: 0.0.40
codegen_flags: <defaults>
</compile_context>

<pallas_src>
import functools

import jax
import jax.numpy as jnp
from jax.experimental import pallas as pl
from jax.experimental.pallas import tpu as pltpu


def _round_up(x, m):
    return ((x + m - 1) // m) * m


def att_kernel(n_valid, bu_ref, h1b_ref, wf_ref, wa_ref, aw_ref, sig_ref):
    # bu_ref : (tB, Np, Fp)  BU_feats batch tile (f32, or bf16 matmul operand)
    # h1b_ref: (tB, 1, Ap)   h1 @ W_dec^T + b_dec + b_feat (hoisted, f32)
    # wf_ref : (Fp, Ap)      W_feat^T, resident across grid steps
    # wa_ref : (1, 1, Ap)    W_att row (f32), resident
    # aw_ref : (tB, Fp)      attended features
    # sig_ref: (tB, Np)      attention weights (softmax over regions)
    tB, Np, Fp = bu_ref.shape
    Ap = wf_ref.shape[1]

    bu = bu_ref[...]

    # img_att for the whole batch tile: one (tB*Np, Fp) @ (Fp, Ap) MXU matmul,
    # f32 accumulation.
    img_att = jnp.dot(bu.reshape(tB * Np, Fp), wf_ref[...],
                      preferred_element_type=jnp.float32).reshape(tB, Np, Ap)

    # att1 = relu(h1_att + img_att + biases); dropout == identity (eval mode).
    att1 = jnp.maximum(img_att + h1b_ref[...], jnp.float32(0.0))       # (tB,Np,Ap)

    # att2 = att1 @ W_att^T as VPU multiply + last-axis (lane) reduce — a
    # 1-output-column MXU matmul would waste nearly the whole systolic array.
    # b_att is omitted: softmax is shift-invariant.
    logits = jnp.sum(att1 * wa_ref[...], axis=-1)                      # (tB, Np)

    # Mask padded regions (N -> Np) so the softmax only sees real regions.
    if n_valid < Np:
        col = jax.lax.broadcasted_iota(jnp.int32, (tB, Np), 1)
        logits = jnp.where(col < n_valid, logits, -jnp.inf)

    # Softmax over regions on the lane-dense (tB, Np) layout; EUP reciprocal.
    m = jnp.max(logits, axis=-1, keepdims=True)
    e = jnp.exp(logits - m)
    denom = jnp.sum(e, axis=-1, keepdims=True)
    sig = e * pl.reciprocal(denom, approx=True)                        # (tB, Np)
    sig_ref[...] = sig.astype(sig_ref.dtype)

    # aw_images[b] = sum_n sig[b, n] * BU_feats[b, n, :] as a batched
    # (1, Np) @ (Np, Fp) matvec with lane-dense (tB, Fp) output.
    # sig stays f32 (casting it to bf16 would lose ~3 decimal digits).
    aw = jnp.einsum("bqn,bnf->bqf", sig[:, None, :], bu.astype(jnp.float32),
                    preferred_element_type=jnp.float32)                # (tB,1,Fp)
    aw_ref[...] = aw.reshape(tB, Fp).astype(aw_ref.dtype)


def _vmem_budget_bytes():
    """Physical VMEM per TensorCore minus ~18% headroom for compiler scratch."""
    phys = None
    try:
        phys = int(pltpu.get_tpu_info().vmem_capacity_bytes)
    except Exception:
        phys = None
    if phys is None:
        try:
            kind = jax.devices()[0].device_kind.lower()
        except Exception:
            kind = ""
        if "v7" in kind:
            phys = 64 << 20                       # v7x: 64 MiB per TC
        elif any(g in kind for g in ("v4", "v5", "v6")):
            phys = 128 << 20                      # v4/v5e/v6e: 128 MiB
        else:
            phys = 64 << 20                       # unknown: conservative
    return max(16 << 20, int(phys * 0.82))


def att_module_forward(bu_feats, h1, w_feat_t, b_feat, w_dec_t, b_dec,
                       w_att, b_att=None, *, matmul_dtype=jnp.float32,
                       max_batch_tile=64):
    """AttModule forward.

    bu_feats: (B, N, F) ; h1: (B, D).
    w_feat_t: (F, A), w_dec_t: (D, A) — weight-normed Linear weights
    pre-transposed to (in, out); w_att: (1, A); biases in natural shapes.
    b_att is accepted for API parity but unused (softmax shift invariance).
    matmul_dtype=jnp.bfloat16 (all generations, incl. v5e) halves the dominant
    DMA stream and hits the native bf16 MXU; accumulation and all elementwise
    math stay f32.
    Returns (aw_images (B, F), sigmoid (B, N)).
    """
    del b_att  # numerically a no-op inside the softmax
    B, N, F = bu_feats.shape
    A = w_feat_t.shape[1]

    Fp = _round_up(F, 128)
    Ap = _round_up(A, 128)
    Np = _round_up(N, 8)
    in_bytes = jnp.dtype(matmul_dtype).itemsize

    budget = _vmem_budget_bytes()

    # Exact per-step VMEM accounting: pipelined inputs x 2 buffers, resident
    # weights, double-buffered outputs, f32 intermediates.
    def _need_bytes(tb):
        bu_blk = 2 * tb * Np * Fp * in_bytes        # pipelined input (2 buffers)
        h1b_blk = 2 * tb * Ap * 4                   # pipelined input (2 buffers)
        wf_res = 2 * Fp * Ap * in_bytes             # resident weight
        wa_res = 2 * Ap * 4                         # resident weight
        out_blk = 2 * (tb * Fp * 4 + tb * Np * 4)   # pipelined outputs
        inter = tb * Np * Ap * 4                    # img_att / att1 (f32)
        if jnp.dtype(matmul_dtype) != jnp.dtype(jnp.float32):
            inter += tb * Np * Fp * 4               # f32 upcast of bu for aw
        return bu_blk + h1b_blk + wf_res + wa_res + out_blk + inter

    # Batch tile: multiple of 8 (sublanes), shrink until it fits the budget.
    b_ceil8 = _round_up(B, 8)
    tb = max(8, _round_up(min(int(max_batch_tile), b_ceil8), 8))
    while tb > 8 and _need_bytes(tb) > int(0.9 * budget):
        tb = max(8, _round_up(tb // 2, 8))
    Bp = _round_up(B, tb)

    vmem_limit = int(min(budget,
                         max(int(1.2 * _need_bytes(tb)) + (1 << 20), 16 << 20)))

    # Hoisted h1 projection: one (B, D) @ (D, A) matmul outside the kernel;
    # b_dec and b_feat add to the same pre-ReLU tensor, so fold them in here.
    h1b = (jnp.dot(h1.astype(jnp.float32), w_dec_t.astype(jnp.float32),
                   precision=jax.lax.Precision.HIGHEST)
           + b_dec.astype(jnp.float32) + b_feat.astype(jnp.float32))
    h1b = h1b.reshape(B, 1, A)

    # Zero-pad to lane/sublane-friendly shapes. Zero padding is exact through
    # both matmuls; the padded-N softmax columns are masked in-kernel and the
    # padded B/F rows/lanes are sliced off below.
    bu_k = jnp.zeros((Bp, Np, Fp), matmul_dtype).at[:B, :N, :F].set(
        bu_feats.astype(matmul_dtype))
    h1b_p = jnp.zeros((Bp, 1, Ap), jnp.float32).at[:B, :, :A].set(h1b)
    wf_k = jnp.zeros((Fp, Ap), matmul_dtype).at[:F, :A].set(
        w_feat_t.astype(matmul_dtype))
    wa_p = jnp.zeros((1, 1, Ap), jnp.float32).at[:, :, :A].set(
        w_att.reshape(1, 1, A).astype(jnp.float32))

    kernel = functools.partial(att_kernel, N)

    aw_p, sig_p = pl.pallas_call(
        kernel,
        grid=(Bp // tb,),
        in_specs=[
            pl.BlockSpec((tb, Np, Fp), lambda b: (b, 0, 0)),   # bu (advances)
            pl.BlockSpec((tb, 1, Ap), lambda b: (b, 0, 0)),    # h1b (advances)
            pl.BlockSpec((Fp, Ap), lambda b: (0, 0)),          # W_feat resident
            pl.BlockSpec((1, 1, Ap), lambda b: (0, 0, 0)),     # W_att resident
        ],
        out_specs=[
            pl.BlockSpec((tb, Fp), lambda b: (b, 0)),
            pl.BlockSpec((tb, Np), lambda b: (b, 0)),
        ],
        out_shape=(
            jax.ShapeDtypeStruct((Bp, Fp), jnp.float32),
            jax.ShapeDtypeStruct((Bp, Np), jnp.float32),
        ),
        compiler_params=pltpu.CompilerParams(
            dimension_semantics=("parallel",),
            vmem_limit_bytes=vmem_limit),
    )(bu_k, h1b_p, wf_k, wa_p)

    return aw_p[:B, :F], sig_p[:B, :N]


# ----------------------------- test utilities ------------------------------

def _weight_norm(v, g):
    # PyTorch weight_norm default dim=0: per-output-row norm. v, g for (out, in).
    norm = jnp.sqrt(jnp.sum(v * v, axis=1, keepdims=True))
    return (g[:, None] / norm) * v


def _reference(bu_feats, h1, w_feat, b_feat, w_dec, b_dec, w_att, b_att):
    hp = jax.lax.Precision.HIGHEST
    h1_att = jnp.dot(h1, w_dec.T, precision=hp) + b_dec                     # (B, A)
    img_att = jnp.einsum("bnf,af->bna", bu_feats, w_feat, precision=hp) + b_feat
    att1 = jnp.maximum(h1_att[:, None, :] + img_att, 0.0)
    att2 = jnp.einsum("bna,oa->bno", att1, w_att, precision=hp) + b_att     # (B,N,1)
    attention = att2[..., 0]
    attention = attention - jnp.max(attention, axis=1, keepdims=True)
    e = jnp.exp(attention)
    sig = e / jnp.sum(e, axis=1, keepdims=True)
    aw = jnp.sum(bu_feats * sig[..., None], axis=1)
    return aw, sig


def _make_params(key, featureSize, decodeSize, attSize):
    k = jax.random.split(key, 9)
    v_feat = jax.random.normal(k[0], (attSize, featureSize), jnp.float32) * 0.1
    g_feat = jnp.abs(jax.random.normal(k[1], (attSize,), jnp.float32)) + 0.5
    b_feat = jax.random.normal(k[2], (attSize,), jnp.float32) * 0.1
    v_dec = jax.random.normal(k[3], (attSize, decodeSize), jnp.float32) * 0.1
    g_dec = jnp.abs(jax.random.normal(k[4], (attSize,), jnp.float32)) + 0.5
    b_dec = jax.random.normal(k[5], (attSize,), jnp.float32) * 0.1
    v_att = jax.random.normal(k[6], (1, attSize), jnp.float32) * 0.1
    g_att = jnp.abs(jax.random.normal(k[7], (1,), jnp.float32)) + 0.5
    b_att = jax.random.normal(k[8], (1,), jnp.float32) * 0.1
    w_feat = _weight_norm(v_feat, g_feat)   # (attSize, featureSize)
    w_dec = _weight_norm(v_dec, g_dec)      # (attSize, decodeSize)
    w_att = _weight_norm(v_att, g_att)      # (1, attSize)
    return w_feat, b_feat, w_dec, b_dec, w_att, b_att


if __name__ == "__main__":
    key = jax.random.PRNGKey(0)
    k_in, k_p, k_in2, k_p2 = jax.random.split(key, 4)

    # ---- Test 1: small shapes consistent with the module's forward ----------
    B, N, featureSize, decodeSize, attSize = 2, 8, 32, 16, 32
    ki = jax.random.split(k_in, 2)
    bu_feats = jax.random.normal(ki[0], (B, N, featureSize), jnp.float32)
    h1 = jax.random.normal(ki[1], (B, decodeSize), jnp.float32)
    w_feat, b_feat, w_dec, b_dec, w_att, b_att = _make_params(
        k_p, featureSize, decodeSize, attSize)

    aw_ref, sig_ref = _reference(bu_feats, h1, w_feat, b_feat, w_dec, b_dec,
                                 w_att, b_att)

    # f32 path.
    aw, sig = att_module_forward(bu_feats, h1, w_feat.T, b_feat, w_dec.T, b_dec,
                                 w_att, b_att)
    jax.block_until_ready((aw, sig))
    assert aw.shape == (B, featureSize) and sig.shape == (B, N)
    assert jnp.allclose(aw, aw_ref, atol=5e-3, rtol=5e-3)
    assert jnp.allclose(sig, sig_ref, atol=5e-3, rtol=5e-3)
    assert jnp.allclose(jnp.sum(sig, axis=1), jnp.ones((B,)), atol=5e-3)

    # bf16 matmul-operand path (recommended on v5e/v6e/v7x): f32 accumulation.
    aw_bf, sig_bf = att_module_forward(bu_feats, h1, w_feat.T, b_feat,
                                       w_dec.T, b_dec, w_att, b_att,
                                       matmul_dtype=jnp.bfloat16)
    jax.block_until_ready((aw_bf, sig_bf))
    assert jnp.allclose(aw_bf, aw_ref, atol=5e-2, rtol=5e-2)
    assert jnp.allclose(sig_bf, sig_ref, atol=5e-2, rtol=5e-2)

    # ---- Test 2: exercises B/N/F/A padding, the softmax N-mask and a -------
    # ---- multi-step (parallel) batch grid with the weights kept resident. --
    B2, N2, F2, D2, A2 = 20, 10, 40, 24, 48
    ki2 = jax.random.split(k_in2, 2)
    bu2 = jax.random.normal(ki2[0], (B2, N2, F2), jnp.float32)
    h12 = jax.random.normal(ki2[1], (B2, D2), jnp.float32)
    w_feat2, b_feat2, w_dec2, b_dec2, w_att2, b_att2 = _make_params(
        k_p2, F2, D2, A2)

    aw_ref2, sig_ref2 = _reference(bu2, h12, w_feat2, b_feat2, w_dec2, b_dec2,
                                   w_att2, b_att2)
    aw2, sig2 = att_module_forward(bu2, h12, w_feat2.T, b_feat2, w_dec2.T,
                                   b_dec2, w_att2, b_att2, max_batch_tile=8)
    jax.block_until_ready((aw2, sig2))
    assert aw2.shape == (B2, F2) and sig2.shape == (B2, N2)
    assert jnp.allclose(aw2, aw_ref2, atol=5e-3, rtol=5e-3)
    assert jnp.allclose(sig2, sig_ref2, atol=5e-3, rtol=5e-3)
    assert jnp.allclose(jnp.sum(sig2, axis=1), jnp.ones((B2,)), atol=5e-3)

    print("KERNEL_OK")
</pallas_src>

<mosaic_0001>
module attributes {stable_mosaic.version = 11 : i64} {
  func.func @att_kernel(%arg0: i32, %arg1: memref<8x8x128xf32, #tpu.memory_space<vmem>>, %arg2: memref<8x1x128xf32, #tpu.memory_space<vmem>>, %arg3: memref<128x128xf32, #tpu.memory_space<vmem>>, %arg4: memref<1x1x128xf32, #tpu.memory_space<vmem>>, %arg5: memref<8x128xf32, #tpu.memory_space<vmem>>, %arg6: memref<8x8xf32, #tpu.memory_space<vmem>>) attributes {dimension_semantics = [#tpu.dimension_semantics<parallel>], iteration_bounds = array<i64: 1>, scalar_prefetch = 0 : i64, scratch_operands = 0 : i64, tpu.core_type = #tpu.core_type<tc>, window_params = [{transform_indices = @transform_0, window_bounds = array<i64: 8, 8, 128>}, {transform_indices = @transform_1, window_bounds = array<i64: 8, 1, 128>}, {pipeline_mode = #tpu.pipeline_mode<synchronous>, transform_indices = @transform_2, window_bounds = array<i64: 128, 128>}, {pipeline_mode = #tpu.pipeline_mode<synchronous>, transform_indices = @transform_3, window_bounds = array<i64: 1, 1, 128>}, {transform_indices = @transform_4, window_bounds = array<i64: 8, 128>}, {transform_indices = @transform_5, window_bounds = array<i64: 8, 8>}]} {
    %c0 = arith.constant 0 : index
    %c0_0 = arith.constant 0 : index
    %c0_1 = arith.constant 0 : index
    %0 = vector.load %arg1[%c0, %c0_0, %c0_1] : memref<8x8x128xf32, #tpu.memory_space<vmem>>, vector<8x8x128xf32>
    %1 = vector.shape_cast %0 : vector<8x8x128xf32> to vector<64x128xf32>
    %c0_2 = arith.constant 0 : index
    %c0_3 = arith.constant 0 : index
    %2 = vector.load %arg3[%c0_2, %c0_3] : memref<128x128xf32, #tpu.memory_space<vmem>>, vector<128x128xf32>
    %cst = arith.constant dense<0.000000e+00> : vector<64x128xf32>
    %3 = tpu.matmul %1, %2, %cst {dimension_numbers = #tpu.dot_dimension_numbers<[1], [0], [0], [1], [0, 0, 1, 1], [], []>} : vector<64x128xf32>, vector<128x128xf32>, vector<64x128xf32> -> vector<64x128xf32>
    %4 = vector.shape_cast %3 : vector<64x128xf32> to vector<8x8x128xf32>
    %c0_4 = arith.constant 0 : index
    %c0_5 = arith.constant 0 : index
    %c0_6 = arith.constant 0 : index
    %5 = vector.load %arg2[%c0_4, %c0_5, %c0_6] : memref<8x1x128xf32, #tpu.memory_space<vmem>>, vector<8x1x128xf32>
    %6 = vector.broadcast %5 : vector<8x1x128xf32> to vector<8x8x128xf32>
    %7 = arith.addf %4, %6 : vector<8x8x128xf32>
    %cst_7 = arith.constant 0.000000e+00 : f32
    %8 = vector.broadcast %cst_7 : f32 to vector<8x8x128xf32>
    %9 = arith.maximumf %7, %8 : vector<8x8x128xf32>
    %c0_8 = arith.constant 0 : index
    %c0_9 = arith.constant 0 : index
    %c0_10 = arith.constant 0 : index
    %10 = vector.load %arg4[%c0_8, %c0_9, %c0_10] : memref<1x1x128xf32, #tpu.memory_space<vmem>>, vector<1x1x128xf32>
    %11 = vector.broadcast %10 : vector<1x1x128xf32> to vector<8x8x128xf32>
    %12 = arith.mulf %9, %11 : vector<8x8x128xf32>
    %cst_11 = arith.constant dense<0.000000e+00> : vector<8x8xf32>
    %13 = vector.multi_reduction <add>, %12, %cst_11 [2] : vector<8x8x128xf32> to vector<8x8xf32>
    %cst_12 = arith.constant dense<0xFF800000> : vector<8xf32>
    %14 = vector.multi_reduction <maximumf>, %13, %cst_12 [1] : vector<8x8xf32> to vector<8xf32>
    %15 = vector.shape_cast %14 : vector<8xf32> to vector<8x1xf32>
    %16 = vector.broadcast %15 : vector<8x1xf32> to vector<8x8xf32>
    %17 = arith.subf %13, %16 : vector<8x8xf32>
    %18 = math.exp %17 : vector<8x8xf32>
    %cst_13 = arith.constant dense<0.000000e+00> : vector<8xf32>
    %19 = vector.multi_reduction <add>, %18, %cst_13 [1] : vector<8x8xf32> to vector<8xf32>
    %20 = vector.shape_cast %19 : vector<8xf32> to vector<8x1xf32>
    %21 = tpu.reciprocal %20 {approx = true} : vector<8x1xf32> -> vector<8x1xf32>
    %22 = vector.broadcast %21 : vector<8x1xf32> to vector<8x8xf32>
    %23 = arith.mulf %18, %22 : vector<8x8xf32>
    %c0_14 = arith.constant 0 : index
    %c0_15 = arith.constant 0 : index
    %24 = vector.load %arg6[%c0_14, %c0_15] : memref<8x8xf32, #tpu.memory_space<vmem>>, vector<8x8xf32>
    tpu.vector_store %arg6[%c0_14, %c0_15], %23 {strides = array<i32>} : memref<8x8xf32, #tpu.memory_space<vmem>>, vector<8x8xf32>,
    %25 = vector.shape_cast %23 : vector<8x8xf32> to vector<8x1x8xf32>
    "tpu.trace_start"() <{level = 10 : i32, message = "bqn,bnf->bqf"}> : () -> ()
    %cst_16 = arith.constant dense<0.000000e+00> : vector<8x1x128xf32>
    %26 = tpu.matmul %25, %0, %cst_16 {dimension_numbers = #tpu.dot_dimension_numbers<[2], [1], [1], [2], [0, 0, 0, 1, 1, 2], [0], [0]>} : vector<8x1x8xf32>, vector<8x8x128xf32>, vector<8x1x128xf32> -> vector<8x1x128xf32>
    "tpu.trace_stop"() : () -> ()
    %27 = vector.shape_cast %26 : vector<8x1x128xf32> to vector<8x128xf32>
    %c0_17 = arith.constant 0 : index
    %c0_18 = arith.constant 0 : index
    %28 = vector.load %arg5[%c0_17, %c0_18] : memref<8x128xf32, #tpu.memory_space<vmem>>, vector<8x128xf32>
    tpu.vector_store %arg5[%c0_17, %c0_18], %27 {strides = array<i32>} : memref<8x128xf32, #tpu.memory_space<vmem>>, vector<8x128xf32>,
    return
  }
  func.func @transform_0(%arg0: i32) -> (i32, i32, i32) {
    %c0_i32 = arith.constant 0 : i32
    %c0_i32_0 = arith.constant 0 : i32
    %c0_i32_1 = arith.constant 0 : i32
    return %arg0, %c0_i32, %c0_i32_0 : i32, i32, i32
  }
  func.func @transform_1(%arg0: i32) -> (i32, i32, i32) {
    %c0_i32 = arith.constant 0 : i32
    %c0_i32_0 = arith.constant 0 : i32
    %c0_i32_1 = arith.constant 0 : i32
    return %arg0, %c0_i32, %c0_i32_0 : i32, i32, i32
  }
  func.func @transform_2(%arg0: i32) -> (i32, i32) {
    %c0_i32 = arith.constant 0 : i32
    %c0_i32_0 = arith.constant 0 : i32
    %c0_i32_1 = arith.constant 0 : i32
    return %c0_i32, %c0_i32_0 : i32, i32
  }
  func.func @transform_3(%arg0: i32) -> (i32, i32, i32) {
    %c0_i32 = arith.constant 0 : i32
    %c0_i32_0 = arith.constant 0 : i32
    %c0_i32_1 = arith.constant 0 : i32
    %c0_i32_2 = arith.constant 0 : i32
    return %c0_i32, %c0_i32_0, %c0_i32_1 : i32, i32, i32
  }
  func.func @transform_4(%arg0: i32) -> (i32, i32) {
    %c0_i32 = arith.constant 0 : i32
    %c0_i32_0 = arith.constant 0 : i32
    return %arg0, %c0_i32 : i32, i32
  }
  func.func @transform_5(%arg0: i32) -> (i32, i32) {
    %c0_i32 = arith.constant 0 : i32
    %c0_i32_0 = arith.constant 0 : i32
    return %arg0, %c0_i32 : i32, i32
  }
}

</mosaic_0001>

<bundles_post_ra>
// kernel: tpu_custom_call.1
= control target key start
LH: loop header
LB: loop body
LE: loop exit
PB: predicated region body
PF: predicated region fallthrough
CT: control target
= control target key end

     0   :  { %11 = vsyncpa [#allocation3], 0  ;;  %s982_s0 = inlined_call_operand.hbm [shape: f32[8,8,128], index: 0, kind: input, shape index: {}]   ;;  %s983_s1 = inlined_call_operand.hbm [shape: f32[8,1,128], index: 1, kind: input, shape index: {}]   ;;  %s984_s2 = inlined_call_operand.hbm [shape: f32[128,128], index: 2, kind: input, shape index: {}]   ;;  %s985_s3 = inlined_call_operand.vmem [shape: f32[1,1,128], index: 3, kind: input, shape index: {}]   ;;  %s986_s4 = inlined_call_operand.hbm [shape: f32[8,128], index: 4, kind: output, shape index: {0}]   ;;  %s987_s5 = inlined_call_operand.hbm [shape: f32[8,8], index: 5, kind: output, shape index: {1}]  }
   0x1   :  { %12 = vsyncpa [#allocation6], 0 }
   0x2   :  { %13 = vsyncpa [#allocation4], 0  ;;  %s32_s20 = sshll.u32 %s983_s1, 4  ;;  %s33_s20 = int_to_ptr.hbm [resolvable:$true] %s32_s20 }
   0x3   :  { %14 = vsyncpa [#allocation10], 0  ;;  %s839_s21 = smov [#allocation5]   ;;  %s19_s25 = sshll.u32 %s982_s0, 4  ;;  %s20_s25 = int_to_ptr.hbm [resolvable:$true] %s19_s25 }
   0x4   :  { %s34_s22 = sshll.u32 %s839_s21, 4  ;;  %s840_s26 = smov 16   ;;  %s35_s22 = int_to_ptr.vmem [resolvable:$true] %s34_s22 }
   0x5   :  { %s841_s27 = smov 1   ;;  %s842_s28 = smov [#allocation2]  }
   0x6   :  { %40 = dma.hbm_to_vmem [thread:$0]  %s33_s20, 128, %s35_s22, [#allocation6], %s840_s26, %s840_s26, %s841_s27  }
   0x7   :  { %s21_s29 = sshll.u32 %s842_s28, 4  ;;  %s843_s30 = smov 128   ;;  %s22_s29 = int_to_ptr.vmem [resolvable:$true] %s21_s29 }
   0x8   :  { %s844_s6 = smov 8   ;;  %s45_s8 = sshll.u32 %s984_s2, 4  ;;  %s46_s8 = int_to_ptr.hbm [resolvable:$true] %s45_s8 }
   0x9   :  { %27 = dma.hbm_to_vmem [thread:$0]  %s20_s25, 1024, %s22_s29, [#allocation3], %s843_s30, %s843_s30, %s844_s6  }
   0xa   :  { %s845_s9 = smov [#allocation7]  }
   0xb   :  { %s47_s10 = sshll.u32 %s845_s9, 4  ;;  %s48_s10 = int_to_ptr.vmem [resolvable:$true] %s47_s10 }
   0xc   :  { %53 = dma.hbm_to_vmem [thread:$0]  %s46_s8, 2048, %s48_s10, [#allocation6], %s843_s30, %s843_s30, %s844_s6  }
   0xd   :  { %831 = dma.done.wait [#allocation3], 1024  }
   0xe   :  { %832 = vsyncadd [#allocation3], 4294966272 }
   0xf   :  { %833 = dma.done.wait [#allocation6], 2176  }
  0x10   :  { %834 = vsyncadd [#allocation6], 4294965120  ;;  %v91_v0 = vld [vmem:[#allocation7 + $0x78] sm:$0xff]  ;;  %v90_v1 = vld [vmem:[#allocation7 + $0x70] sm:$0xff]  ;;  %vm227_vm0 = vcmask 1041409   ;;  %vm229_vm1 = vcmask 1042434  }
  0x11   :  { %92 = vmatpush.msra.mxu0 %v91_v0  ;;  %655 = vmatpush.msra.mxu3 %v91_v0  ;;  %v89_v2 = vld [vmem:[#allocation7 + $0x68] sm:$0xff]  ;;  %v88_v3 = vld [vmem:[#allocation7 + $0x60] sm:$0xff]  ;;  %v87_v4 = vld [vmem:[#allocation7 + $0x58] sm:$0xff]  ;;  %vm231_vm2 = vcmask 1043459   ;;  %vm233_vm3 = vcmask 1044484   ;;  %vm235_vm4 = vcmask 1045509  }
  0x12   :  { %v68_v5 = vld [vmem:[#allocation2] sm:$0xff]  ;;  %v86_v6 = vld [vmem:[#allocation7 + $0x50] sm:$0xff]  ;;  %v69_v7 = vld [vmem:[#allocation2 + $0x8] sm:$0xff]  ;;  %vm237_vm5 = vcmask 1046534   ;;  %vm239_vm6 = vcmask 1047559   ;;  %vm242_vm7 = vcmask 64512  }
  0x13   :  { %93 = vmatpush.msra.mxu0 %v90_v1  ;;  %656 = vmatpush.msra.mxu3 %v90_v1  ;;  %v72_v8 = vld [vmem:[#allocation2 + $0x20] sm:$0xff]  ;;  %v70_v9 = vld [vmem:[#allocation2 + $0x10] sm:$0xff]  ;;  %v84_v11 = vld [vmem:[#allocation7 + $0x40] sm:$0xff]  ;;  %s631_s14 = sshll.u32 %s987_s5, 4  ;;  %s848_s5 = smov [#allocation8]   ;;  %s632_s14 = int_to_ptr.hbm [resolvable:$true] %s631_s14 }
  0x14   :  { %430 = vmatpush.msra.mxu1 %v68_v5  ;;  %452 = vmatpush.msra.mxu2 %v69_v7  ;;  %v85_v10 = vld [vmem:[#allocation7 + $0x48] sm:$0xff]  ;;  %v83_v12 = vld [vmem:[#allocation7 + $0x38] sm:$0xff]  ;;  %v82_v13 = vld [vmem:[#allocation7 + $0x30] sm:$0xff]  ;;  %s618_s15 = sshll.u32 %s848_s5, 4  ;;  %s620_s18 = sshll.u32 %s986_s4, 4  ;;  %s619_s15 = int_to_ptr.vmem [resolvable:$true] %s618_s15  ;;  %s621_s18 = int_to_ptr.hbm [resolvable:$true] %s620_s18 }
  0x15   :  { %94 = vmatpush.msra.mxu0 %v89_v2  ;;  %657 = vmatpush.msra.mxu3 %v89_v2  ;;  %v81_v14 = vld [vmem:[#allocation7 + $0x28] sm:$0xff]  ;;  %v80_v15 = vld [vmem:[#allocation7 + $0x20] sm:$0xff]  ;;  %v79_v16 = vld [vmem:[#allocation7 + $0x18] sm:$0xff] }
  0x16   :  { %518 = vmatpush.msrb.mxu2 %v72_v8  ;;  %474 = vmatpush.msrb.mxu1 %v70_v9  ;;  %v78_v17 = vld [vmem:[#allocation7 + $0x10] sm:$0xff]  ;;  %v77_v18 = vld [vmem:[#allocation7 + $0x8] sm:$0xff]  ;;  %v76_v19 = vld [vmem:[#allocation7] sm:$0xff] }
  0x17   :  { %95 = vmatpush.msra.mxu0 %v88_v3  ;;  %658 = vmatpush.msra.mxu3 %v88_v3  ;;  %v888_v20 = vld [vmem:[#allocation2 + $0x18] sm:$0xff]  ;;  %v891_v21 = vld [vmem:[#allocation2 + $0x28] sm:$0xff]  ;;  %v894_v22 = vld [vmem:[#allocation2 + $0x30] sm:$0xff]  ;;  %v217_v3 = vlaneseq }
  0x18   :  { %v897_v23 = vld [vmem:[#allocation2 + $0x38] sm:$0xff]  ;;  %v684_v24 = vld [vmem:[#allocation5] ss:$0 sm:$0xff]  ;;  %v685_v29 = vld [vmem:[#allocation5 + $0x3] ss:$0 sm:$0xff] }
  0x19   :  { %96 = vmatpush.msra.mxu0 %v87_v4  ;;  %659 = vmatpush.msra.mxu3 %v87_v4  ;;  %v687_v27 = vld [vmem:[%s985_s3] ss:$0 sm:$0xff]  ;;  %v686_v30 = vld [vmem:[#allocation5 + $0x1] ss:$0 sm:$0xff]  ;;  %v688_v39 = vld [vmem:[#allocation5 + $0x4] ss:$0 sm:$0xff] }
  0x1a   :  { %v689_v40 = vld [vmem:[#allocation5 + $0x2] ss:$0 sm:$0xff]  ;;  %v690_v49 = vld [vmem:[#allocation5 + $0x5] ss:$0 sm:$0xff]  ;;  %v691_v55 = vld [vmem:[#allocation5 + $0x6] ss:$0 sm:$0xff] }
  0x1b   :  { %97 = vmatpush.msra.mxu0 %v86_v6  ;;  %660 = vmatpush.msra.mxu3 %v86_v6  ;;  %v692_v60 = vld [vmem:[#allocation5 + $0x7] ss:$0 sm:$0xff]  ;;  %v903_v6 = vand.u32 127, %v217_v3  ;;  %s847_s3 = smov [#allocation9]  }
  0x1c   :  { %s629_s11 = sshll.u32 %s847_s3, 4  ;;  %s630_s11 = int_to_ptr.vmem [resolvable:$true] %s629_s11 }
  0x1d   :  { %98 = vmatpush.msra.mxu0 %v85_v10  ;;  %661 = vmatpush.msra.mxu3 %v85_v10 }
  0x1f   :  { %99 = vmatpush.msra.mxu0 %v84_v11  ;;  %662 = vmatpush.msra.mxu3 %v84_v11 }
  0x21   :  { %100 = vmatpush.msra.mxu0 %v83_v12  ;;  %663 = vmatpush.msra.mxu3 %v83_v12 }
  0x23   :  { %101 = vmatpush.msra.mxu0 %v82_v13  ;;  %664 = vmatpush.msra.mxu3 %v82_v13 }
  0x25   :  { %102 = vmatpush.msra.mxu0 %v81_v14  ;;  %665 = vmatpush.msra.mxu3 %v81_v14 }
  0x27   :  { %103 = vmatpush.msra.mxu0 %v80_v15  ;;  %666 = vmatpush.msra.mxu3 %v80_v15 }
  0x29   :  { %104 = vmatpush.msra.mxu0 %v79_v16  ;;  %667 = vmatpush.msra.mxu3 %v79_v16 }
  0x2b   :  { %105 = vmatpush.msra.mxu0 %v78_v17  ;;  %668 = vmatpush.msra.mxu3 %v78_v17 }
  0x2d   :  { %106 = vmatpush.msra.mxu0 %v77_v18  ;;  %669 = vmatpush.msra.mxu3 %v77_v18 }
  0x2f   :  { %107 = vmatpush.msra.mxu0 %v76_v19  ;;  %670 = vmatpush.msra.mxu3 %v76_v19 }
  0x30   :  { %108 = vmatmul.f32.vlgmr.msra.gmra.mxu0 %v68_v5  ;;  %117 = vmatmul.f32.vlgmr.msra.gmra.mxu3 %v888_v20 }
  0x38   :  { %111 = vmatmul.f32.gmra.mxu0 %v69_v7  ;;  %120 = vmatmul.f32.gmra.mxu3 %v72_v8 }
  0x40   :  { %114 = vmatmul.f32.gmra.mxu0 %v70_v9  ;;  %123 = vmatmul.f32.gmra.mxu3 %v891_v21 }
  0x48   :  { %126 = vmatmul.f32.gmra.mxu3 %v894_v22 }
  0x50   :  { %129 = vmatmul.f32.gmra.mxu3 %v897_v23 }
  0xad   :  { %v109_v25 = vpop.f32.mrf.mxu0 }
  0xae   :  { %v165_v26 = vadd.f32 %v684_v24, %v109_v25 }
  0xb0   :  { %v173_v28 = vmax.f32 %v165_v26, 0.0 }
  0xb2   :  { %v185_v31 = vmul.f32 %v687_v27, %v173_v28 }
  0xb3   :  { %v118_v32 = vpop.f32.mrf.mxu3 }
  0xb4   :  { %v168_v33 = vadd.f32 %v685_v29, %v118_v32  ;;  %193 = vadd.xlane.f32.xlu0 %v185_v31  ;;  %v846_v31 = vmov 0  }
  0xb5   :  { %v112_v34 = vpop.f32.mrf.mxu0  ;;  %683 = vset.pattern.permute.xlu2 %v846_v31  ;;  %682 = vset.pattern.permute.xlu1 %v846_v31 }
  0xb6   :  { %v176_v35 = vmax.f32 %v168_v33, 0.0  ;;  %v166_v36 = vadd.f32 %v686_v30, %v112_v34  ;;  %681 = vset.pattern.permute.xlu0 %v846_v31 }
  0xb8   :  { %v174_v37 = vmax.f32 %v166_v36, 0.0  ;;  %v188_v38 = vmul.f32 %v687_v27, %v176_v35 }
  0xba   :  { %199 = vadd.xlane.f32.xlu1 %v188_v38  ;;  %v186_v41 = vmul.f32 %v687_v27, %v174_v37 }
  0xbb   :  { %v121_v42 = vpop.f32.mrf.mxu3 }
  0xbc   :  { %v169_v43 = vadd.f32 %v688_v39, %v121_v42  ;;  %195 = vadd.xlane.f32.xlu0 %v186_v41 }
  0xbd   :  { %v115_v44 = vpop.f32.mrf.mxu0 }
  0xbe   :  { %v177_v45 = vmax.f32 %v169_v43, 0.0  ;;  %v167_v46 = vadd.f32 %v689_v40, %v115_v44 }
  0xc0   :  { %v175_v47 = vmax.f32 %v167_v46, 0.0  ;;  %v189_v48 = vmul.f32 %v687_v27, %v177_v45 }
  0xc2   :  { %201 = vadd.xlane.f32.xlu2 %v189_v48  ;;  %v187_v50 = vmul.f32 %v687_v27, %v175_v47 }
  0xc3   :  { %v124_v51 = vpop.f32.mrf.mxu3 }
  0xc4   :  { %v170_v52 = vadd.f32 %v690_v49, %v124_v51  ;;  %197 = vadd.xlane.f32.xlu1 %v187_v50 }
  0xc6   :  { %v178_v53 = vmax.f32 %v170_v52, 0.0 }
  0xc8   :  { %v190_v54 = vmul.f32 %v687_v27, %v178_v53 }
  0xca   :  { %203 = vadd.xlane.f32.xlu2 %v190_v54 }
  0xcb   :  { %v127_v56 = vpop.f32.mrf.mxu3 }
  0xcc   :  { %v171_v57 = vadd.f32 %v691_v55, %v127_v56 }
  0xce   :  { %v179_v58 = vmax.f32 %v171_v57, 0.0 }
  0xd0   :  { %v191_v59 = vmul.f32 %v687_v27, %v179_v58 }
  0xd2   :  { %205 = vadd.xlane.f32.xlu0 %v191_v59 }
  0xd3   :  { %v130_v61 = vpop.f32.mrf.mxu3 }
  0xd4   :  { %v172_v62 = vadd.f32 %v692_v60, %v130_v61 }
  0xd6   :  { %v180_v63 = vmax.f32 %v172_v62, 0.0 }
  0xd8   :  { %v192_v0 = vmul.f32 %v687_v27, %v180_v63 }
  0xda   :  { %207 = vadd.xlane.f32.xlu1 %v192_v0 }
 0x127   :  { %v194_v1 = vpop.xlane.xlu0 %193 }
 0x128   :  { %v219_v7 = vperm.slane %v194_v1, %v903_v6 }
 0x12d   :  { %v200_v2 = vpop.xlane.xlu1 %199 }
 0x12e   :  { %v222_v14 = vperm.slane %v200_v2, %v903_v6 }
 0x12f   :  { %v196_v5 = vpop.xlane.xlu0 %195 }
 0x130   :  { %v220_v8 = vperm.slane %v196_v5, %v903_v6 }
 0x132   :  { %v228_v11 = vsel %vm227_vm0, %v220_v8, %v219_v7 }
 0x135   :  { %v202_v4 = vpop.xlane.xlu2 %201 }
 0x136   :  { %v223_v18 = vperm.slane %v202_v4, %v903_v6 }
 0x137   :  { %v198_v9 = vpop.xlane.xlu1 %197 }
 0x138   :  { %v221_v10 = vperm.slane %v198_v9, %v903_v6 }
 0x13a   :  { %v230_v12 = vsel %vm229_vm1, %v221_v10, %v228_v11 }
 0x13b   :  { %v232_v16 = vsel %vm231_vm2, %v222_v14, %v230_v12 }
 0x13c   :  { %v234_v25 = vsel %vm233_vm3, %v223_v18, %v232_v16 }
 0x13d   :  { %v204_v13 = vpop.xlane.xlu2 %203 }
 0x13e   :  { %v224_v17 = vperm.slane %v204_v13, %v903_v6 }
 0x140   :  { %v236_v27 = vsel %vm235_vm4, %v224_v17, %v234_v25 }
 0x145   :  { %v206_v15 = vpop.xlane.xlu0 %205 }
 0x146   :  { %v225_v19 = vperm.slane %v206_v15, %v903_v6 }
 0x148   :  { %v238_v28 = vsel %vm237_vm5, %v225_v19, %v236_v27 }
 0x14d   :  { %v208_v24 = vpop.xlane.xlu1 %207 }
 0x14e   :  { %v226_v26 = vperm.slane %v208_v24, %v903_v6 }
 0x150   :  { %v240_v29 = vsel %vm239_vm6, %v226_v26, %v238_v28 }
 0x151   :  { %v243_v30 = vsel %vm242_vm7, %v240_v29, -inf }
 0x152   :  { %244 = vmax.xlane.f32.xlu2 %v243_v30 }
 0x1c5   :  { %v245_v32 = vpop.xlane.xlu2 %244 }
 0x1c6   :  { %v249_v33 = vperm.slane %v245_v32, 2  ;;  %v248_v34 = vperm.slane %v245_v32, 1  ;;  %v247_v35 = vperm.slane %v245_v32, 0  ;;  %v250_v39 = vperm.slane %v245_v32, 3 }
 0x1c7   :  { %v251_v40 = vperm.slane %v245_v32, 4  ;;  %v254_v41 = vperm.slane %v245_v32, 7  ;;  %v252_v49 = vperm.slane %v245_v32, 5  ;;  %v253_v51 = vperm.slane %v245_v32, 6 }
 0x1c8   :  { %v265_v36 = vsub.f32 %v198_v9, %v249_v33  ;;  %v264_v37 = vsub.f32 %v196_v5, %v248_v34  ;;  %v263_v38 = vsub.f32 %v194_v1, %v247_v35  ;;  %v266_v45 = vsub.f32 %v200_v2, %v250_v39 }
 0x1c9   :  { %v267_v46 = vsub.f32 %v202_v4, %v251_v40  ;;  %v270_v47 = vsub.f32 %v208_v24, %v254_v41  ;;  %v268_v56 = vsub.f32 %v204_v13, %v252_v49  ;;  %v269_v57 = vsub.f32 %v206_v15, %v253_v51 }
 0x1ca   :  { %v275_v42 = vmul.f32 1.442695, %v265_v36  ;;  %v273_v43 = vmul.f32 1.442695, %v264_v37  ;;  %v271_v44 = vmul.f32 1.442695, %v263_v38 }
 0x1cb   :  { %v277_v48 = vmul.f32 1.442695, %v266_v45  ;;  %v279_v50 = vmul.f32 1.442695, %v267_v46  ;;  %v285_v53 = vmul.f32 1.442695, %v270_v47 }
 0x1cc   :  { %693 = vpow2.f32 %v275_v42  ;;  %v281_v58 = vmul.f32 1.442695, %v268_v56  ;;  %v283_v59 = vmul.f32 1.442695, %v269_v57 }
 0x1cd   :  { %695 = vpow2.f32 %v273_v43 }
 0x1ce   :  { %697 = vpow2.f32 %v271_v44 }
 0x1cf   :  { %699 = vpow2.f32 %v277_v48 }
 0x1d0   :  { %701 = vpow2.f32 %v279_v50 }
 0x1d1   :  { %703 = vpow2.f32 %v285_v53 }
 0x1d2   :  { %v921_v52 = vpop.eup %693  ;;  %705 = vpow2.f32 %v281_v58 }
 0x1d3   :  { %v696_v54 = vpop.eup %695  ;;  %302 = vperm.xlu2 %683, %v921_v52   ;;  %707 = vpow2.f32 %v283_v59 }
 0x1d4   :  { %v698_v55 = vpop.eup %697  ;;  %299 = vperm.xlu1 %682, %v696_v54  }
 0x1d5   :  { %296 = vperm.xlu0 %681, %v698_v55   ;;  %v700_v60 = vpop.eup %699 }
 0x1d6   :  { %v702_v61 = vpop.eup %701 }
 0x1d7   :  { %v704_v62 = vpop.eup %703 }
 0x1d8   :  { %v706_v63 = vpop.eup %705 }
 0x1d9   :  { %v708_v0 = vpop.eup %707 }
 0x1db   :  { %305 = vperm.xlu2 %683, %v700_v60  }
 0x1dc   :  { %308 = vperm.xlu1 %682, %v702_v61  }
 0x1dd   :  { %317 = vperm.xlu0 %681, %v704_v62  }
 0x1e3   :  { %311 = vperm.xlu2 %683, %v706_v63  }
 0x1e4   :  { %314 = vperm.xlu1 %682, %v708_v0  }
 0x22d   :  { %v303_v1 = vpop.permute.xlu2 %302 }
 0x22e   :  { %v321_v10 = vperm.slane %v303_v1, %v903_v6 }
 0x235   :  { %v306_v4 = vpop.permute.xlu2 %305 }
 0x236   :  { %v322_v13 = vperm.slane %v306_v4, %v903_v6 }
 0x23d   :  { %v312_v14 = vpop.permute.xlu2 %311 }
 0x23e   :  { %v324_v18 = vperm.slane %v312_v14, %v903_v6 }
 0x246   :  { %v300_v2 = vpop.permute.xlu1 %299 }
 0x247   :  { %v297_v3 = vpop.permute.xlu0 %296  ;;  %v320_v5 = vperm.slane %v300_v2, %v903_v6 }
 0x248   :  { %v319_v7 = vperm.slane %v297_v3, %v903_v6 }
 0x24a   :  { %v327_v8 = vsel %vm227_vm0, %v320_v5, %v319_v7 }
 0x24b   :  { %v328_v11 = vsel %vm229_vm1, %v321_v10, %v327_v8 }
 0x24c   :  { %v329_v15 = vsel %vm231_vm2, %v322_v13, %v328_v11 }
 0x24e   :  { %v309_v9 = vpop.permute.xlu1 %308 }
 0x24f   :  { %v323_v12 = vperm.slane %v309_v9, %v903_v6  ;;  %v318_v17 = vpop.permute.xlu0 %317 }
 0x250   :  { %v326_v25 = vperm.slane %v318_v17, %v903_v6 }
 0x251   :  { %v330_v16 = vsel %vm233_vm3, %v323_v12, %v329_v15 }
 0x252   :  { %v331_v26 = vsel %vm235_vm4, %v324_v18, %v330_v16 }
 0x256   :  { %v315_v19 = vpop.permute.xlu1 %314 }
 0x257   :  { %v325_v24 = vperm.slane %v315_v19, %v903_v6 }
 0x259   :  { %v332_v27 = vsel %vm237_vm5, %v325_v24, %v331_v26 }
 0x25a   :  { %v333_v28 = vsel %vm239_vm6, %v326_v25, %v332_v27 }
 0x25b   :  { %v335_v29 = vsel %vm242_vm7, %v333_v28, 0.0 }
 0x25c   :  { %336 = vadd.xlane.f32.xlu2 %v335_v29 }
 0x2cf   :  { %v337_v30 = vpop.xlane.xlu2 %336 }
 0x2d0   :  { %709 = vrcp.f32 %v337_v30 }
 0x2d6   :  { %v710_v31 = vpop.eup %709 }
 0x2d7   :  { %v341_v32 = vperm.slane %v710_v31, 1  ;;  %v340_v33 = vperm.slane %v710_v31, 0  ;;  %v344_v36 = vperm.slane %v710_v31, 4  ;;  %v342_v37 = vperm.slane %v710_v31, 2 }
 0x2d8   :  { %v345_v40 = vperm.slane %v710_v31, 5  ;;  %v343_v41 = vperm.slane %v710_v31, 3  ;;  %v347_v44 = vperm.slane %v710_v31, 7  ;;  %v346_v45 = vperm.slane %v710_v31, 6 }
 0x2d9   :  { %v357_v34 = vmul.f32 %v696_v54, %v341_v32  ;;  %v356_v35 = vmul.f32 %v698_v55, %v340_v33  ;;  %v360_v38 = vmul.f32 %v702_v61, %v344_v36  ;;  %v358_v39 = vmul.f32 %v921_v52, %v342_v37 }
 0x2da   :  { %v361_v42 = vmul.f32 %v706_v63, %v345_v40  ;;  %v359_v43 = vmul.f32 %v700_v60, %v343_v41  ;;  %v363_v46 = vmul.f32 %v704_v62, %v347_v44  ;;  %v362_v47 = vmul.f32 %v708_v0, %v346_v45 }
 0x2db   :  { %376 = vperm.xlu1 %682, %v357_v34   ;;  %373 = vperm.xlu0 %681, %v356_v35  }
 0x2e3   :  { %385 = vperm.xlu1 %682, %v360_v38   ;;  %379 = vperm.xlu0 %681, %v358_v39  }
 0x2eb   :  { %388 = vperm.xlu1 %682, %v361_v42   ;;  %382 = vperm.xlu0 %681, %v359_v43  }
 0x2f3   :  { %394 = vperm.xlu1 %682, %v363_v46   ;;  %391 = vperm.xlu0 %681, %v362_v47  }
 0x34d   :  { %v377_v48 = vpop.permute.xlu1 %376  ;;  %v374_v49 = vpop.permute.xlu0 %373 }
 0x34e   :  { %v397_v50 = vperm.slane %v377_v48, %v903_v6  ;;  %v396_v51 = vperm.slane %v374_v49, %v903_v6 }
 0x350   :  { %647 = vmatmul.msk.f32.vlgmr.msra.gmra.mxu1 %vm242_vm7, %v396_v51  ;;  %648 = vmatmul.msk.f32.vlgmr.msra.gmra.mxu2 %vm242_vm7, %v397_v50  ;;  %v404_v58 = vsel %vm227_vm0, %v397_v50, %v396_v51 }
 0x351   :  { %540 = vmatpush.msra.mxu2 %v891_v21  ;;  %496 = vmatpush.msra.mxu1 %v888_v20 }
 0x355   :  { %v386_v52 = vpop.permute.xlu1 %385  ;;  %v380_v53 = vpop.permute.xlu0 %379 }
 0x356   :  { %v400_v54 = vperm.slane %v386_v52, %v903_v6  ;;  %v398_v55 = vperm.slane %v380_v53, %v903_v6 }
 0x358   :  { %649 = vmatmul.msk.f32.vlgmr.msrb.gmra.mxu1 %vm242_vm7, %v398_v55  ;;  %651 = vmatmul.msk.f32.vlgmr.msrb.gmra.mxu2 %vm242_vm7, %v400_v54  ;;  %v405_v59 = vsel %vm229_vm1, %v398_v55, %v404_v58 }
 0x359   :  { %584 = vmatpush.msrb.mxu2 %v897_v23  ;;  %562 = vmatpush.msrb.mxu1 %v894_v22 }
 0x35d   :  { %v389_v56 = vpop.permute.xlu1 %388  ;;  %v383_v57 = vpop.permute.xlu0 %382 }
 0x35e   :  { %v401_v21 = vperm.slane %v389_v56, %v903_v6  ;;  %v399_v20 = vperm.slane %v383_v57, %v903_v6 }
 0x360   :  { %650 = vmatmul.msk.f32.vlgmr.msra.gmra.mxu1 %vm242_vm7, %v399_v20  ;;  %652 = vmatmul.msk.f32.vlgmr.msra.gmra.mxu2 %vm242_vm7, %v401_v21  ;;  %v406_v60 = vsel %vm231_vm2, %v399_v20, %v405_v59 }
 0x361   :  { %v407_v23 = vsel %vm233_vm3, %v400_v54, %v406_v60 }
 0x362   :  { %v408_v0 = vsel %vm235_vm4, %v401_v21, %v407_v23 }
 0x365   :  { %v395_v61 = vpop.permute.xlu1 %394  ;;  %v392_v22 = vpop.permute.xlu0 %391 }
 0x366   :  { %v403_v62 = vperm.slane %v395_v61, %v903_v6  ;;  %v402_v63 = vperm.slane %v392_v22, %v903_v6 }
 0x368   :  { %v409_v1 = vsel %vm237_vm5, %v402_v63, %v408_v0  ;;  %653 = vmatmul.msk.f32.vlgmr.msrb.gmra.mxu1 %vm242_vm7, %v402_v63  ;;  %654 = vmatmul.msk.f32.vlgmr.msrb.gmra.mxu2 %vm242_vm7, %v403_v62 }
 0x369   :  { %v410_v2 = vsel %vm239_vm6, %v403_v62, %v409_v1 }
 0x36a   :  { %412 = vst.msk [vmem:[#allocation9] sm:$0xff] %vm242_vm7, %v410_v2 }
 0x36b   :  { %634 = dma.vmem_to_hbm [thread:$0]  %s630_s11, 128, %s632_s14, [#allocation10]  }
 0x3cd   :  { %v432_v6 = vpop.f32.mrf.mxu1 }
 0x3d3   :  { %v454_v3 = vpop.f32.mrf.mxu2 }
 0x3d4   :  { %v597_v8 = vrot.slane %v454_v3, 7 }
 0x3d5   :  { %v476_v4 = vpop.f32.mrf.mxu1 }
 0x3d6   :  { %v599_v9 = vrot.slane %v476_v4, 6  ;;  %v598_v10 = vsel %vm227_vm0, %v597_v8, %v432_v6 }
 0x3d8   :  { %v600_v13 = vsel %vm229_vm1, %v599_v9, %v598_v10 }
 0x3db   :  { %v520_v5 = vpop.f32.mrf.mxu2 }
 0x3dc   :  { %v603_v17 = vrot.slane %v520_v5, 4 }
 0x3dd   :  { %v498_v7 = vpop.f32.mrf.mxu1 }
 0x3de   :  { %v601_v11 = vrot.slane %v498_v7, 5 }
 0x3e0   :  { %v602_v14 = vsel %vm231_vm2, %v601_v11, %v600_v13 }
 0x3e1   :  { %v604_v18 = vsel %vm233_vm3, %v603_v17, %v602_v14 }
 0x3e3   :  { %v542_v12 = vpop.f32.mrf.mxu2 }
 0x3e4   :  { %v605_v15 = vrot.slane %v542_v12, 3 }
 0x3e5   :  { %v564_v16 = vpop.f32.mrf.mxu1 }
 0x3e6   :  { %v607_v19 = vrot.slane %v564_v16, 2  ;;  %v606_v24 = vsel %vm235_vm4, %v605_v15, %v604_v18 }
 0x3e8   :  { %v608_v27 = vsel %vm237_vm5, %v607_v19, %v606_v24 }
 0x3eb   :  { %v586_v25 = vpop.f32.mrf.mxu2 }
 0x3ec   :  { %v609_v26 = vrot.slane %v586_v25, 1 }
 0x3ee   :  { %v610_v28 = vsel %vm239_vm6, %v609_v26, %v608_v27 }
 0x3ef   :  { %612 = vst [vmem:[#allocation8] sm:$0xff] %v610_v28 }
 0x3f0   :  { %623 = dma.vmem_to_hbm [thread:$0]  %s619_s15, 128, %s621_s18, [#allocation4]  }
 0x3f1   :  { %835 = dma.done.wait [#allocation4], 128  }
 0x3f2   :  { %836 = vsyncadd [#allocation4], 4294967168 }
 0x3f3   :  { %837 = dma.done.wait [#allocation10], 128  }
 0x3f4   :  { %838 = vsyncadd [#allocation10], 4294967168 }
 0x3f5   :  { %643 = vsyncpa [#allocation3], 1 }
 0x3f6   :  { %644 = vsyncpa [#allocation6], 1 }
 0x3f7   :  { %645 = vsyncpa [#allocation4], 1 }
 0x3f8   :  { %646 = vsyncpa [#allocation10], 1 }

</bundles_post_ra>
